<compile_context>
chip_gen: v7x
topology: tpu7x:2x2x1
jax: 0.10.0
libtpu: 0.0.40
codegen_flags: <defaults>
</compile_context>

<pallas_src>
import functools

import jax
import jax.numpy as jnp
from jax import lax
from jax.experimental import pallas as pl
from jax.experimental.pallas import tpu as pltpu

_LANE = 128


def _sublane_multiple(dtype):
    itemsize = jnp.dtype(dtype).itemsize
    return {4: 8, 2: 16, 1: 32}.get(itemsize, 8)


def _vmem_limits():
    """Per-generation scoped VMEM limit and kernel working-set budget."""
    phys = 64 * 1024 * 1024  # conservative fallback (v7x-class per-TC VMEM)
    try:
        info = pltpu.get_tpu_info()
        v = getattr(info, "vmem_capacity_bytes", None)
        if isinstance(v, int) and v > 0:
            phys = v
    except Exception:
        pass
    if phys >= 128 * 1024 * 1024:          # v5e / v6e class
        limit = 64 * 1024 * 1024
    else:                                   # v7x class (64 MiB physical)
        limit = min(48 * 1024 * 1024, (phys * 3) // 4)
    budget = max(8 * 1024 * 1024, limit - 8 * 1024 * 1024)
    return limit, budget


def _pick_tile_n(n, num_features, dtype, num_clusters, vmem_budget_bytes):
    """Largest x tile (rows) whose *layout-padded* working set fits the budget."""
    itemsize = jnp.dtype(dtype).itemsize
    lane_w = pl.cdiv(num_features, _LANE) * _LANE      # lane-padded feature width
    in_row = lane_w * itemsize                         # bytes/row of the x block
    f32_row = lane_w * 4
    k_pad = pl.cdiv(max(num_clusters, 1), 8) * 8       # sublane-padded K
    per_row = (
        2 * in_row            # double-buffered input block
        + in_row              # masked copy x_m
        + 2 * f32_row         # f32 cast + elementwise square (worst case)
        + 6 * k_pad * 4       # (K, tn) f32/i32 temps: cross, d2, cmp, onehot, ...
        + 4 * 8 * 4           # (1, tn) iota / validity / x_sq temps
    )
    rows = max(1, vmem_budget_bytes // per_row)
    mult = _sublane_multiple(dtype)
    rows = max(mult, (rows // mult) * mult)
    rows = min(rows, 65536)
    if n <= rows:
        return n, 1
    if rows >= 512:
        rows = (rows // 512) * 512          # clean lane-dense tiling
    return rows, pl.cdiv(n, rows)


def _clustering_kernel(x_ref, c_ref, d2_ref, rows_ref, *, n_total):
    i = pl.program_id(1)

    @pl.when(i == 0)
    def _init():
        d2_ref[...] = jnp.full_like(d2_ref, jnp.inf)
        rows_ref[...] = jnp.zeros_like(rows_ref)

    x = x_ref[...]                       # (tn, F), native dtype (MXU operand)
    c = c_ref[...]                       # (K, F)
    tn, f = x.shape

    # Global start of this (nominal) tile; overflow tiles (index-map clamped)
    # get start >= n_total and are fully masked out below.
    start = (pl.program_id(0) * pl.num_programs(1) + i) * tn

    # (1, tn) global point ids / validity — lane-major, broadcast lazily.
    col_ids = lax.broadcasted_iota(jnp.int32, (1, tn), 1) + start
    col_valid = col_ids < n_total

    # Zero out-of-range rows before any matmul (NaN/Inf padding guard).
    row_valid = (lax.broadcasted_iota(jnp.int32, (tn, 1), 0) + start) < n_total
    x_m = jnp.where(row_valid, x, jnp.zeros_like(x))

    # cross[k, j] = <c_k, x_j>  -> (K, tn): points on the lane axis.
    # Same q @ k^T MXU pattern as flash attention (no relayout of x expected).
    cross = lax.dot_general(
        c, x_m, (((1,), (1,)), ((), ())), preferred_element_type=jnp.float32)

    # ||x_j||^2 as a (1, tn) row via a ones-row matmul (stays lane-major,
    # avoids a sublane->lane transpose of a reduced column).
    xf = x_m.astype(jnp.float32)
    ones_row = jnp.ones((1, f), dtype=jnp.float32)
    x_sq = lax.dot_general(
        ones_row, xf * xf, (((1,), (1,)), ((), ())),
        preferred_element_type=jnp.float32)                      # (1, tn)

    # Squared distance up to the per-cluster constant ||c_k||^2 (irrelevant for
    # the argmin over points); invalid columns pushed to +inf.
    d2 = jnp.where(col_valid, x_sq - 2.0 * cross, jnp.inf)       # (K, tn)

    # Per-tile argmin along lanes, first-occurrence tie-break within the tile.
    tile_min = jnp.min(d2, axis=1, keepdims=True)                # (K, 1)
    sentinel = jnp.int32(2147483647)
    tile_idx = jnp.min(jnp.where(d2 == tile_min, col_ids, sentinel),
                       axis=1, keepdims=True)                    # (K, 1)

    # Gather the within-tile winning rows via a small one-hot matmul on the
    # masked tile (exact: at most one 1.0 per row).
    onehot = (col_ids == tile_idx).astype(x_m.dtype)             # (K, tn)
    tile_rows = jnp.dot(onehot, x_m,
                        preferred_element_type=jnp.float32
                        ).astype(rows_ref.dtype)                 # (K, F)

    # Running-min update carried in the (per-core) output blocks.  Strict '<'
    # keeps the earliest tile's winner on exact ties (matches torch.min
    # first-occurrence semantics across tiles).
    improve = tile_min < d2_ref[...]                             # (K, 1)
    d2_ref[...] = jnp.where(improve, tile_min, d2_ref[...])
    rows_ref[...] = jnp.where(improve, tile_rows, rows_ref[...])


def clustering_layer_forward(x, cluster_centers, *, tile_n=None,
                             num_core_splits=None):
    """x: (1, n, num_features); cluster_centers: (num_clusters, num_features)."""
    assert x.ndim == 3 and x.shape[0] == 1
    num_clusters, num_features = cluster_centers.shape
    _, n, f = x.shape
    assert n > num_clusters and f == num_features

    x2d = x[0]                                  # (n, F)
    dtype = x.dtype
    itemsize = jnp.dtype(dtype).itemsize
    sub_mult = _sublane_multiple(dtype)

    vmem_limit, vmem_budget = _vmem_limits()

    if tile_n is None:
        tn, grid_n = _pick_tile_n(n, num_features, dtype, num_clusters,
                                  vmem_budget)
    elif n <= tile_n:
        tn, grid_n = n, 1
    else:
        assert tile_n % sub_mult == 0, (
            f"tile_n must be a multiple of {sub_mult} for dtype {dtype}")
        tn, grid_n = tile_n, pl.cdiv(n, tile_n)

    # Split the n reduction across (up to) 2 TensorCores: leading "parallel"
    # axis; per-core partials are combined with a tiny argmin in plain JAX.
    # Harmless (serial) on 1-TC chips, ~2x on megacore parts.
    if num_core_splits is None:
        num_core_splits = 2 if grid_n >= 2 else 1
    ncs = max(1, min(num_core_splits, grid_n))
    gpc = pl.cdiv(grid_n, ncs)                  # grid steps per core

    def x_index_map(cc, ii):
        # Clamp nominal overflow tiles (grid_n % ncs != 0) onto the last valid
        # block; the kernel's global col-id mask ignores their contents.
        return (jnp.minimum(cc * gpc + ii, grid_n - 1), 0)

    kernel = functools.partial(_clustering_kernel, n_total=n)

    cost = pl.CostEstimate(
        flops=2 * (2 * num_clusters + 1) * num_features * (ncs * gpc * tn),
        transcendentals=0,
        bytes_accessed=(n * num_features * itemsize
                        + num_clusters * num_features * itemsize
                        + ncs * num_clusters * (num_features * itemsize + 4)),
    )

    d2_parts, row_parts = pl.pallas_call(
        kernel,
        out_shape=(
            jax.ShapeDtypeStruct((ncs, num_clusters, 1), jnp.float32),
            jax.ShapeDtypeStruct((ncs, num_clusters, num_features), dtype),
        ),
        grid_spec=pltpu.PrefetchScalarGridSpec(
            num_scalar_prefetch=0,
            grid=(ncs, gpc),
            in_specs=[
                pl.BlockSpec((tn, num_features), x_index_map),
                pl.BlockSpec((num_clusters, num_features),
                             lambda cc, ii: (0, 0)),
            ],
            out_specs=(
                pl.BlockSpec((None, num_clusters, 1),
                             lambda cc, ii: (cc, 0, 0)),
                pl.BlockSpec((None, num_clusters, num_features),
                             lambda cc, ii: (cc, 0, 0)),
            ),
        ),
        compiler_params=pltpu.CompilerParams(
            dimension_semantics=("parallel", "arbitrary"),
            vmem_limit_bytes=vmem_limit,
        ),
        cost_estimate=cost,
    )(x2d, cluster_centers)

    # Cross-core combine (K-sized, trivial).  First-occurrence argmin keeps the
    # lower core (= lower point index) on exact ties, matching torch.min.
    best_core = jnp.argmin(d2_parts[:, :, 0], axis=0)                    # (K,)
    out = jnp.take_along_axis(row_parts, best_core[None, :, None], axis=0)[0]
    return out[None]                                                     # (1,K,F)


def _reference_forward(x, cluster_centers):
    # Pure-JAX reference reproducing the PyTorch forward exactly.
    x_exp = x[:, :, None, :]                         # (1, n, 1, F)
    c_exp = cluster_centers[None, None, :, :]        # (1, 1, K, F)
    dist = jnp.linalg.norm(x_exp - c_exp, axis=3)    # (1, n, K)
    indices = jnp.argmin(dist, axis=1)               # (1, K)
    return jnp.take_along_axis(x, indices[..., None], axis=1)  # (1, K, F)


if __name__ == "__main__":
    key = jax.random.PRNGKey(0)
    k_x, k_c = jax.random.split(key)

    # Small shapes; n chosen so the forced-tile run has 3 tiles (incl. a
    # partial last tile) split across the 2-way core axis.
    n, num_features, num_clusters = 300, 32, 4
    x = jax.random.normal(k_x, (1, n, num_features), dtype=jnp.float32)
    cluster_centers = jax.random.normal(
        k_c, (num_clusters, num_features), dtype=jnp.float32
    )

    ref = _reference_forward(x, cluster_centers)

    # 1) Forced small tile: exercises tiling, the core split, partial last
    #    tile masking, and the clamped overflow tile.
    out_tiled = clustering_layer_forward(x, cluster_centers, tile_n=128)
    out_tiled = jax.block_until_ready(out_tiled)
    assert out_tiled.shape == (1, num_clusters, num_features)
    assert jnp.allclose(out_tiled, ref, atol=1e-5), "tiled mismatch vs reference"

    # 2) Auto configuration (large-tile path; single tile at this small n).
    out_auto = clustering_layer_forward(x, cluster_centers)
    out_auto = jax.block_until_ready(out_auto)
    assert jnp.allclose(out_auto, ref, atol=1e-5), "auto mismatch vs reference"

    print("KERNEL_OK")
</pallas_src>

<mosaic_0001>
module attributes {stable_mosaic.version = 11 : i64} {
  func.func @_clustering_kernel(%arg0: i32, %arg1: i32, %arg2: memref<128x32xf32, #tpu.memory_space<vmem>>, %arg3: memref<4x32xf32, #tpu.memory_space<vmem>>, %arg4: memref<1x4x1xf32, #tpu.memory_space<vmem>>, %arg5: memref<1x4x32xf32, #tpu.memory_space<vmem>>) attributes {dimension_semantics = [#tpu.dimension_semantics<parallel>, #tpu.dimension_semantics<arbitrary>], iteration_bounds = array<i64: 2, 2>, scalar_prefetch = 0 : i64, scratch_operands = 0 : i64, tpu.core_type = #tpu.core_type<tc>, window_params = [{transform_indices = @transform_0, window_bounds = array<i64: 128, 32>}, {pipeline_mode = #tpu.pipeline_mode<synchronous>, transform_indices = @transform_1, window_bounds = array<i64: 4, 32>}, {transform_indices = @transform_2, window_bounds = array<i64: 1, 4, 1>}, {transform_indices = @transform_3, window_bounds = array<i64: 1, 4, 32>}]} {
    %c0_i32 = arith.constant 0 : i32
    %0 = arith.cmpi eq, %arg1, %c0_i32 : i32
    %1 = arith.extui %0 : i1 to i32
    %c0_i32_0 = arith.constant 0 : i32
    %2 = arith.cmpi ne, %1, %c0_i32_0 : i32
    scf.if %2 {
      %cst_28 = arith.constant 0x7F800000 : f32
      %67 = vector.broadcast %cst_28 : f32 to vector<4x1xf32>
      %c0_29 = arith.constant 0 : index
      %c0_30 = arith.constant 0 : index
      %c0_31 = arith.constant 0 : index
      %68 = vector.load %arg4[%c0_29, %c0_30, %c0_31] : memref<1x4x1xf32, #tpu.memory_space<vmem>>, vector<1x4x1xf32>
      %69 = vector.shape_cast %68 : vector<1x4x1xf32> to vector<4x1xf32>
      %70 = vector.shape_cast %67 : vector<4x1xf32> to vector<1x4x1xf32>
      tpu.vector_store %arg4[%c0_29, %c0_30, %c0_31], %70 {strides = array<i32>} : memref<1x4x1xf32, #tpu.memory_space<vmem>>, vector<1x4x1xf32>,
      %cst_32 = arith.constant 0.000000e+00 : f32
      %71 = vector.broadcast %cst_32 : f32 to vector<4x32xf32>
      %c0_33 = arith.constant 0 : index
      %c0_34 = arith.constant 0 : index
      %c0_35 = arith.constant 0 : index
      %72 = vector.load %arg5[%c0_33, %c0_34, %c0_35] : memref<1x4x32xf32, #tpu.memory_space<vmem>>, vector<1x4x32xf32>
      %73 = vector.shape_cast %72 : vector<1x4x32xf32> to vector<4x32xf32>
      %74 = vector.shape_cast %71 : vector<4x32xf32> to vector<1x4x32xf32>
      tpu.vector_store %arg5[%c0_33, %c0_34, %c0_35], %74 {strides = array<i32>} : memref<1x4x32xf32, #tpu.memory_space<vmem>>, vector<1x4x32xf32>,
    } else {
    }
    %c0 = arith.constant 0 : index
    %c0_1 = arith.constant 0 : index
    %3 = vector.load %arg2[%c0, %c0_1] : memref<128x32xf32, #tpu.memory_space<vmem>>, vector<128x32xf32>
    %c0_2 = arith.constant 0 : index
    %c0_3 = arith.constant 0 : index
    %4 = vector.load %arg3[%c0_2, %c0_3] : memref<4x32xf32, #tpu.memory_space<vmem>>, vector<4x32xf32>
    %c2_i32 = arith.constant 2 : i32
    %5 = arith.muli %arg0, %c2_i32 : i32
    %6 = arith.addi %5, %arg1 : i32
    %c128_i32 = arith.constant 128 : i32
    %7 = arith.muli %6, %c128_i32 : i32
    %8 = tpu.iota {dimensions = array<i32: 1>} : vector<1x128xi32>
    %9 = vector.broadcast %7 : i32 to vector<1x128xi32>
    %10 = arith.addi %8, %9 : vector<1x128xi32>
    %c300_i32 = arith.constant 300 : i32
    %11 = vector.broadcast %c300_i32 : i32 to vector<1x128xi32>
    %12 = arith.cmpi slt, %10, %11 : vector<1x128xi32>
    %13 = tpu.iota {dimensions = array<i32: 0>} : vector<128x1xi32>
    %14 = vector.broadcast %7 : i32 to vector<128x1xi32>
    %15 = arith.addi %13, %14 : vector<128x1xi32>
    %c300_i32_4 = arith.constant 300 : i32
    %16 = vector.broadcast %c300_i32_4 : i32 to vector<128x1xi32>
    %17 = arith.cmpi slt, %15, %16 : vector<128x1xi32>
    %cst = arith.constant 0.000000e+00 : f32
    %18 = vector.broadcast %cst : f32 to vector<128x32xf32>
    %19 = vector.shape_cast %17 : vector<128x1xi1> to vector<128x1xi1>
    %20 = vector.broadcast %19 : vector<128x1xi1> to vector<128x32xi1>
    %21 = arith.select %20, %3, %18 : vector<128x32xi1>, vector<128x32xf32>
    %cst_5 = arith.constant dense<0.000000e+00> : vector<4x128xf32>
    %22 = tpu.matmul %4, %21, %cst_5 {dimension_numbers = #tpu.dot_dimension_numbers<[1], [1], [0], [0], [0, 0, 1, 0], [], []>} : vector<4x32xf32>, vector<128x32xf32>, vector<4x128xf32> -> vector<4x128xf32>
    %cst_6 = arith.constant 1.000000e+00 : f32
    %23 = vector.broadcast %cst_6 : f32 to vector<1x32xf32>
    %24 = arith.mulf %21, %21 : vector<128x32xf32>
    %cst_7 = arith.constant dense<0.000000e+00> : vector<1x128xf32>
    %25 = tpu.matmul %23, %24, %cst_7 {dimension_numbers = #tpu.dot_dimension_numbers<[1], [1], [0], [0], [0, 0, 1, 0], [], []>} : vector<1x32xf32>, vector<128x32xf32>, vector<1x128xf32> -> vector<1x128xf32>
    %cst_8 = arith.constant 2.000000e+00 : f32
    %26 = vector.broadcast %cst_8 : f32 to vector<4x128xf32>
    %27 = arith.mulf %26, %22 : vector<4x128xf32>
    %28 = vector.broadcast %25 : vector<1x128xf32> to vector<4x128xf32>
    %29 = arith.subf %28, %27 : vector<4x128xf32>
    %cst_9 = arith.constant 0x7F800000 : f32
    %30 = vector.shape_cast %12 : vector<1x128xi1> to vector<1x128xi1>
    %31 = vector.broadcast %30 : vector<1x128xi1> to vector<4x128xi1>
    %32 = vector.broadcast %cst_9 : f32 to vector<4x128xf32>
    %33 = arith.select %31, %29, %32 : vector<4x128xi1>, vector<4x128xf32>
    %cst_10 = arith.constant dense<0x7F800000> : vector<4xf32>
    %34 = vector.multi_reduction <minimumf>, %33, %cst_10 [1] : vector<4x128xf32> to vector<4xf32>
    %35 = vector.shape_cast %34 : vector<4xf32> to vector<4x1xf32>
    %36 = vector.broadcast %35 : vector<4x1xf32> to vector<4x128xf32>
    %37 = arith.cmpf oeq, %33, %36 : vector<4x128xf32>
    %c2147483647_i32 = arith.constant 2147483647 : i32
    %38 = vector.shape_cast %10 : vector<1x128xi32> to vector<1x128xi32>
    %39 = vector.broadcast %38 : vector<1x128xi32> to vector<4x128xi32>
    %40 = vector.broadcast %c2147483647_i32 : i32 to vector<4x128xi32>
    %41 = arith.select %37, %39, %40 : vector<4x128xi1>, vector<4x128xi32>
    %cst_11 = arith.constant dense<2147483647> : vector<4xi32>
    %42 = vector.multi_reduction <minsi>, %41, %cst_11 [1] : vector<4x128xi32> to vector<4xi32>
    %43 = vector.shape_cast %42 : vector<4xi32> to vector<4x1xi32>
    %44 = vector.broadcast %10 : vector<1x128xi32> to vector<4x128xi32>
    %45 = vector.broadcast %43 : vector<4x1xi32> to vector<4x128xi32>
    %46 = arith.cmpi eq, %44, %45 : vector<4x128xi32>
    %47 = arith.extui %46 : vector<4x128xi1> to vector<4x128xi32>
    %48 = arith.sitofp %47 : vector<4x128xi32> to vector<4x128xf32>
    %cst_12 = arith.constant dense<0.000000e+00> : vector<4x32xf32>
    %49 = tpu.matmul %48, %21, %cst_12 {dimension_numbers = #tpu.dot_dimension_numbers<[1], [0], [0], [1], [0, 0, 1, 1], [], []>} : vector<4x128xf32>, vector<128x32xf32>, vector<4x32xf32> -> vector<4x32xf32>
    %c0_13 = arith.constant 0 : index
    %c0_14 = arith.constant 0 : index
    %c0_15 = arith.constant 0 : index
    %50 = vector.load %arg4[%c0_13, %c0_14, %c0_15] : memref<1x4x1xf32, #tpu.memory_space<vmem>>, vector<1x4x1xf32>
    %51 = vector.shape_cast %50 : vector<1x4x1xf32> to vector<4x1xf32>
    %52 = arith.cmpf olt, %35, %51 : vector<4x1xf32>
    %c0_16 = arith.constant 0 : index
    %c0_17 = arith.constant 0 : index
    %c0_18 = arith.constant 0 : index
    %53 = vector.load %arg4[%c0_16, %c0_17, %c0_18] : memref<1x4x1xf32, #tpu.memory_space<vmem>>, vector<1x4x1xf32>
    %54 = vector.shape_cast %53 : vector<1x4x1xf32> to vector<4x1xf32>
    %55 = arith.select %52, %35, %54 : vector<4x1xi1>, vector<4x1xf32>
    %c0_19 = arith.constant 0 : index
    %c0_20 = arith.constant 0 : index
    %c0_21 = arith.constant 0 : index
    %56 = vector.load %arg4[%c0_19, %c0_20, %c0_21] : memref<1x4x1xf32, #tpu.memory_space<vmem>>, vector<1x4x1xf32>
    %57 = vector.shape_cast %56 : vector<1x4x1xf32> to vector<4x1xf32>
    %58 = vector.shape_cast %55 : vector<4x1xf32> to vector<1x4x1xf32>
    tpu.vector_store %arg4[%c0_19, %c0_20, %c0_21], %58 {strides = array<i32>} : memref<1x4x1xf32, #tpu.memory_space<vmem>>, vector<1x4x1xf32>,
    %c0_22 = arith.constant 0 : index
    %c0_23 = arith.constant 0 : index
    %c0_24 = arith.constant 0 : index
    %59 = vector.load %arg5[%c0_22, %c0_23, %c0_24] : memref<1x4x32xf32, #tpu.memory_space<vmem>>, vector<1x4x32xf32>
    %60 = vector.shape_cast %59 : vector<1x4x32xf32> to vector<4x32xf32>
    %61 = vector.shape_cast %52 : vector<4x1xi1> to vector<4x1xi1>
    %62 = vector.broadcast %61 : vector<4x1xi1> to vector<4x32xi1>
    %63 = arith.select %62, %49, %60 : vector<4x32xi1>, vector<4x32xf32>
    %c0_25 = arith.constant 0 : index
    %c0_26 = arith.constant 0 : index
    %c0_27 = arith.constant 0 : index
    %64 = vector.load %arg5[%c0_25, %c0_26, %c0_27] : memref<1x4x32xf32, #tpu.memory_space<vmem>>, vector<1x4x32xf32>
    %65 = vector.shape_cast %64 : vector<1x4x32xf32> to vector<4x32xf32>
    %66 = vector.shape_cast %63 : vector<4x32xf32> to vector<1x4x32xf32>
    tpu.vector_store %arg5[%c0_25, %c0_26, %c0_27], %66 {strides = array<i32>} : memref<1x4x32xf32, #tpu.memory_space<vmem>>, vector<1x4x32xf32>,
    return
  }
  func.func @transform_0(%arg0: i32, %arg1: i32) -> (i32, i32) {
    %c2_i32 = arith.constant 2 : i32
    %0 = arith.muli %arg0, %c2_i32 : i32
    %1 = arith.addi %0, %arg1 : i32
    %c2_i32_0 = arith.constant 2 : i32
    %2 = arith.minsi %1, %c2_i32_0 : i32
    %c0_i32 = arith.constant 0 : i32
    %c0_i32_1 = arith.constant 0 : i32
    return %2, %c0_i32 : i32, i32
  }
  func.func @transform_1(%arg0: i32, %arg1: i32) -> (i32, i32) {
    %c0_i32 = arith.constant 0 : i32
    %c0_i32_0 = arith.constant 0 : i32
    %c0_i32_1 = arith.constant 0 : i32
    return %c0_i32, %c0_i32_0 : i32, i32
  }
  func.func @transform_2(%arg0: i32, %arg1: i32) -> (i32, i32, i32) {
    %c0_i32 = arith.constant 0 : i32
    %c0_i32_0 = arith.constant 0 : i32
    %c0_i32_1 = arith.constant 0 : i32
    return %arg0, %c0_i32, %c0_i32_0 : i32, i32, i32
  }
  func.func @transform_3(%arg0: i32, %arg1: i32) -> (i32, i32, i32) {
    %c0_i32 = arith.constant 0 : i32
    %c0_i32_0 = arith.constant 0 : i32
    %c0_i32_1 = arith.constant 0 : i32
    return %arg0, %c0_i32, %c0_i32_0 : i32, i32, i32
  }
}

</mosaic_0001>

<bundles_post_ra>
// kernel: tpu_custom_call.1
= control target key start
LH: loop header
LB: loop body
LE: loop exit
PB: predicated region body
PF: predicated region fallthrough
CT: control target
= control target key end

     0   :  { %9 = vsyncpa [#allocation3], 0  ;;  %s1883_s0 = inlined_call_operand.vmem [shape: f32[300,32], index: 0, kind: input, shape index: {}]   ;;  %s1884_s1 = inlined_call_operand.vmem [shape: f32[4,32], index: 1, kind: input, shape index: {}]   ;;  %s1885_s2 = inlined_call_operand.vmem [shape: f32[2,4,1], index: 2, kind: output, shape index: {0}]   ;;  %s1886_s3 = inlined_call_operand.hbm [shape: f32[2,4,32], index: 3, kind: output, shape index: {1}]  }
   0x1   :  { %11 = vsyncpa [#allocation3 + $0x1], 0  ;;  %s1390_s12 = smov 0   ;;  %s1392_s13 = smov 0  }
   0x2   :  { %s1394_s14 = smov 0   ;;  %s1396_s15 = smov 0  }
   0x3   :  { %s1398_s16 = smov 0   ;;  %s1400_s17 = smov 0  }
   0x4   :  { %s1402_s18 = smov 0   ;;  %s1404_s19 = smov 0  }
   0x5 LB: > { %s863_s20 = sadd.s32 4294967295, %s1360_s19   ;;  %s864_s21 = sadd.s32 4294967294, %s1360_s19   ;;  %s1360_s19 = sphi %s1404_s19, %s17_s19   ;;  %s1356_s18 = sphi %s1402_s18, %s1910_s18   ;;  %s1352_s17 = sphi %s1400_s17, %s1909_s17   ;;  %s1348_s16 = sphi %s1398_s16, %s1908_s16   ;;  %s1344_s15 = sphi %s1396_s15, %s1907_s15   ;;  %s1340_s14 = sphi %s1394_s14, %s1906_s14   ;;  %s1336_s13 = sphi %s1392_s13, %s1905_s13   ;;  %s1332_s12 = sphi %s1390_s12, %s1904_s12  }
   0x6   : > { %s26_s22 = sadd.s32 1, %s1352_s17  ;;  %s29_s23 = sadd.s32 1, %s1356_s18 }
   0x7   : > { %p27_p0 = scmp.ge.s32.totalorder %s26_s22, 2  ;;  %p127_p1 = scmp.ne.s32.totalorder %s1340_s14, %s1336_s13 }
   0x8   : > { %p128_p2 = scmp.eq.s32.totalorder %s863_s20, 3  ;;  %p133_p4 = scmp.ne.s32.totalorder %s1336_s13, %s1332_s12 }
   0x9   : > { %s1912_s22 = smov (%p27_p0, %s26_s22), 0  ;;  %s1914_s23 = smov (!%p27_p0, %s29_s23), %s1356_s18 }
   0xa   : > { %p1439_p3 = por %p128_p2, %p127_p1  ;;  %p31_p5 = scmp.ge.s32.totalorder %s1914_s23, 2 }
   0xb   : > { %p134_p6 = scmp.eq.s32.totalorder %s864_s21, 3  ;;  %p869_p7 = scmp.ge.s32.totalorder %s1360_s19, 1 }
   0xc   : > { %p180_p8 = scmp.lt.s32.totalorder %s1360_s19, 5  ;;  %s1916_s23 = smov (%p31_p5, %s1914_s23), 0 }
   0xd   : > { %1894 = sst [smem:[#allocation5_spill]] %s1916_s23  ;;  %p1449_p9 = por %p134_p6, %p133_p4 }
   0xe   : > { %p181_p10 = pnand %p869_p7, %p180_p8  ;;  %s114_s26 = ssub.s32 %s1356_s18, %s1916_s23 }
   0xf   : > { %s117_s27 = sadd.s32 1, %s1340_s14  ;;  %p115_p11 = scmp.eq.s32.totalorder %s114_s26, 0 }
  0x10   : > { %184 = sbr.rel (%p181_p10) target bundleno = 994 (0x3e2), region = 28  ;;  %s213_s29 = sand.u32 (!%p181_p10), 1, %s1336_s13  }
  0x11   : > { %s1457_s28 = scalar_select %p115_p11, %s1340_s14, %s117_s27  }
  0x12   : > { %s871_s30 = sshll.u32 (!%p181_p10), %s1348_s16, 1  ;;  %s870_s4 = sshll.u32 (!%p181_p10), %s213_s29, 2 }
  0x13   : > { %s217_s5 = sadd.s32 (!%p181_p10), %s1344_s15, %s871_s30  ;;  %p238_p13 = scmp.lt.s32.totalorder (!%p181_p10), %s1348_s16, 1 }
  0x14   : > { %p218_p12 = scmp.lt.s32.totalorder (!%p181_p10), %s217_s5, 2  ;;  %s1476_s30 = scalar_lea.vmem (!%p181_p10), [#allocation2], %s870_s4 }
  0x15   : > { %p875_p1 = scmp.ne.s32.totalorder (!%p181_p10), %s1344_s15, 0 }
  0x17   : > { %s219_s6 = scalar_select %p218_p12, %s217_s5, 2 }
  0x18   : > { %s239_s7 = scalar_select %p238_p13, %s1348_s16, 1 }
  0x19   : > { %s872_s8 = sshll.u32 %s219_s6, 4  ;;  %245 = sbr.rel (%p875_p1) target bundleno = 32 (0x20), region = 32  ;;  %vm246_vm0 = vcmask (!%p875_p1), 3072   ;;  %vm248_vm1 = vcmask (!%p875_p1), 257024   ;;  %v1362_v0 = vmov (!%p875_p1), inf   ;;  %v1363_v1 = vmov (!%p875_p1), 0.0  }
  0x1a   : > { %p225_p0 = scmp.lt.s32.totalorder %s872_s8, 37  ;;  %s874_s9 = sshll.u32 %s239_s7, 2  ;;  %249 = vst.msk [vmem:[%s1476_s30] sm:$0xf] (!%p875_p1), %vm248_vm1, %v1363_v1 }
  0x1b   : > { %s1469_s20 = scalar_lea.vmem %s1885_s2, %s874_s9 }
  0x1c   : > { %s1918_s8 = smov (!%p225_p0, %s872_s8), 37  ;;  %247 = vst.msk [vmem:[%s1469_s20] sm:$0xf] (!%p875_p1), %vm246_vm0, %v1362_v0 }
  0x1d   : > { %s873_s21 = sshll.u32 %s1918_s8, 3 }
  0x1e   : > { %s1474_s23 = scalar_lea.vmem %s1883_s0, %s873_s21 }
  0x20 PF: > { %v1482_v2 = vld [vmem:[%s1474_s23] sm:$0xff]  ;;  %v1485_v3 = vld [vmem:[%s1474_s23 + $0x8] sm:$0xff]  ;;  %s877_s15 = sshll.u32 %s217_s5, 7  ;;  %v270_v4 = vlaneseq  ;;  %v1364_v5 = vmov 0.0|0.0   ;;  %v1494_v8 = vld [vmem:[%s1474_s23 + $0x10] sm:$0xff]  ;;  %vm1365_vm2 = vmmov 0  }
  0x21   : > { %1090 = vmatprep.subr.bf16.mxu0 %v1364_v5  ;;  %v1488_v6 = vstv %s877_s15  ;;  %v1155_v7 = vpack.c.bf16 %v1485_v3, %v1482_v2  ;;  %1122 = vmatprep.subr.bf16.mxu1 %v1364_v5  ;;  %v1497_v9 = vld [vmem:[%s1474_s23 + $0x18] sm:$0xff]  ;;  %v1500_v10 = vld [vmem:[%s1474_s23 + $0x20] sm:$0xff]  ;;  %v1508_v13 = vld [vmem:[%s1474_s23 + $0x28] sm:$0xff]  ;;  %v1366_v16 = vmov 0.0   ;;  %vm372_vm3 = vcmask 261120   ;;  %s931_s5 = sshll.u32 %s1348_s16, 6 }
  0x22   : > { %v1503_v11 = vshrl.u32 %v270_v4, 7  ;;  %v1159_v12 = vpack.c.bf16 %v1497_v9, %v1494_v8  ;;  %v1511_v14 = vld [vmem:[%s1474_s23 + $0x30] sm:$0xff]  ;;  %v1514_v15 = vld [vmem:[%s1474_s23 + $0x38] sm:$0xff]  ;;  %1017 = vmatprep.mubr.msk.f32.mxu0 %vm1365_vm2, %v1366_v16  ;;  %1052 = vmatprep.mubr.msk.f32.mxu1 %vm1365_vm2, %v1366_v16  ;;  %v1163_v17 = vpack.c.bf16 %v1508_v13, %v1500_v10  ;;  %vm1554_vm8 = vmpackc.low %vm372_vm3, %vm372_vm3  ;;  %s769_s6 = sshll.u32 %s1476_s30, 4  ;;  %s1827_s9 = scalar_lea.hbm %s1886_s3, %s931_s5  ;;  %s1829_s6 = int_to_ptr.vmem [resolvable:$true] %s769_s6 }
  0x23   : > { %v1167_v18 = vpack.c.bf16 %v1514_v15, %v1511_v14  ;;  %v1579_v43 = vld [vmem:[%s1474_s23 + $0x40] sm:$0xff]  ;;  %v1582_v44 = vld [vmem:[%s1474_s23 + $0x48] sm:$0xff]  ;;  %v1589_v47 = vld [vmem:[%s1474_s23 + $0x50] sm:$0xff]  ;;  %s753_s16 = scalar_lea.sflag [#allocation3], %s213_s29  ;;  %s1266_s10 = scalar_lea.vmem %s1829_s6, 64 }
  0x24   : > { %v277_v19 = vadd.s32 8, %v1503_v11  ;;  %v1527_v20 = vadd.s32 %v1503_v11, %v1488_v6  ;;  %v278_v21 = vadd.s32 16, %v1503_v11  ;;  %v279_v22 = vadd.s32 24, %v1503_v11  ;;  %v1592_v48 = vld [vmem:[%s1474_s23 + $0x58] sm:$0xff]  ;;  %v1614_v57 = vld [vmem:[%s1474_s23 + $0x60] sm:$0xff]  ;;  %v1617_v58 = vld [vmem:[%s1474_s23 + $0x68] sm:$0xff]  ;;  %p1267_p2 = scmp.ne.s32.totalorder %s1829_s6, %s1266_s10 }
  0x25   : > { %v280_v27 = vadd.s32 32, %v1503_v11  ;;  %v281_v28 = vadd.s32 40, %v1503_v11  ;;  %v282_v41 = vadd.s32 48, %v1503_v11  ;;  %v283_v42 = vadd.s32 56, %v1503_v11  ;;  %v1627_v63 = vld [vmem:[%s1474_s23 + $0x70] sm:$0xff]  ;;  %v1630_v0 = vld [vmem:[%s1474_s23 + $0x78] sm:$0xff] }
  0x26   : > { %v1532_v23 = vadd.s32 %v277_v19, %v1488_v6  ;;  %vm308_vm4 = vcmp.lt.s32.totalorder %v1527_v20, 300  ;;  %v1536_v24 = vadd.s32 %v278_v21, %v1488_v6  ;;  %v1539_v25 = vadd.s32 %v279_v22, %v1488_v6  ;;  %p1268_p4 = pnand %p1267_p2, %p1439_p3  ;;  %s1369_s11 = smov [#allocation2]  }
  0x27   : > { %v356_v26 = vsel %vm308_vm4, %v1482_v2, 0.0  ;;  %v1567_v37 = vadd.s32 %v280_v27, %v1488_v6  ;;  %v1570_v38 = vadd.s32 %v281_v28, %v1488_v6  ;;  %v1171_v46 = vpack.c.bf16 %v1582_v44, %v1579_v43 }
  0x28   : > { %vm309_vm5 = vcmp.lt.s32.totalorder %v1532_v23, 300  ;;  %v494_v29 = vmul.f32 %v356_v26, %v356_v26  ;;  %vm310_vm6 = vcmp.lt.s32.totalorder %v1536_v24, 300  ;;  %vm311_vm7 = vcmp.lt.s32.totalorder %v1539_v25, 300  ;;  %p1269_p5 = pneg %p1268_p4 }
  0x29   : > { %v357_v30 = vsel %vm309_vm5, %v1485_v3, 0.0  ;;  %v358_v34 = vsel %vm310_vm6, %v1494_v8, 0.0  ;;  %v359_v35 = vsel %vm311_vm7, %v1497_v9, 0.0  ;;  %vm312_vm9 = vcmp.lt.s32.totalorder %v1567_v37, 300 }
  0x2a   : > { %v1091_v32 = vpack.c.bf16 %v357_v30, %v356_v26  ;;  %v495_v33 = vmul.f32 %v357_v30, %v357_v30  ;;  %v496_v39 = vmul.f32 %v358_v34, %v358_v34  ;;  %v497_v40 = vmul.f32 %v359_v35, %v359_v35 }
  0x2b   : > { %v1095_v45 = vpack.c.bf16 %v359_v35, %v358_v34  ;;  %vm313_vm10 = vcmp.lt.s32.totalorder %v1570_v38, 300  ;;  %v1175_v49 = vpack.c.bf16 %v1592_v48, %v1589_v47  ;;  %v360_v51 = vsel %vm312_vm9, %v1500_v10, 0.0 }
  0x2c   : > { %1093 = vmatpush3.bf16.xpose.msk.msra.mxu0 %vm1554_vm8, %v1091_v32  ;;  %v1123_v36 = vpack.c.bf16 %v495_v33, %v494_v29  ;;  %v1127_v50 = vpack.c.bf16 %v497_v40, %v496_v39  ;;  %v361_v52 = vsel %vm313_vm10, %v1508_v13, 0.0  ;;  %v1603_v53 = vadd.s32 %v282_v41, %v1488_v6 }
  0x2d   : > { %1094 = vmatprep.subr.bf16.mxu0 %v1364_v5  ;;  %v1608_v54 = vadd.s32 %v283_v42, %v1488_v6  ;;  %v498_v55 = vmul.f32 %v360_v51, %v360_v51  ;;  %v499_v56 = vmul.f32 %v361_v52, %v361_v52  ;;  %v1179_v59 = vpack.c.bf16 %v1617_v58, %v1614_v57 }
  0x2e   : > { %1125 = vmatpush3.bf16.xpose.msk.msra.mxu1 %vm1554_vm8, %v1123_v36  ;;  %vm314_vm11 = vcmp.lt.s32.totalorder %v1603_v53, 300  ;;  %v1099_v60 = vpack.c.bf16 %v361_v52, %v360_v51  ;;  %v284_v61 = vadd.s32 64, %v1503_v11  ;;  %v285_v62 = vadd.s32 72, %v1503_v11 }
  0x2f   : > { %1126 = vmatprep.subr.bf16.mxu1 %v1364_v5  ;;  %vm315_vm12 = vcmp.lt.s32.totalorder %v1608_v54, 300  ;;  %v1183_v1 = vpack.c.bf16 %v1630_v0, %v1627_v63  ;;  %v1131_v19 = vpack.c.bf16 %v499_v56, %v498_v55  ;;  %v362_v21 = vsel %vm314_vm11, %v1511_v14, 0.0 }
  0x30   : > { %v363_v22 = vsel %vm315_vm12, %v1514_v15, 0.0  ;;  %v1643_v26 = vadd.s32 %v284_v61, %v1488_v6  ;;  %v1646_v27 = vadd.s32 %v285_v62, %v1488_v6  ;;  %v500_v28 = vmul.f32 %v362_v21, %v362_v21 }
  0x31   : > { %v501_v29 = vmul.f32 %v363_v22, %v363_v22  ;;  %v1103_v30 = vpack.c.bf16 %v363_v22, %v362_v21  ;;  %v286_v32 = vadd.s32 80, %v1503_v11  ;;  %v287_v33 = vadd.s32 88, %v1503_v11 }
  0x32   : > { %vm316_vm13 = vcmp.lt.s32.totalorder %v1643_v26, 300  ;;  %vm317_vm14 = vcmp.lt.s32.totalorder %v1646_v27, 300  ;;  %v289_v51 = vadd.s32 104, %v1503_v11  ;;  %v290_v22 = vadd.s32 112, %v1503_v11 }
  0x33   : > { %v1135_v34 = vpack.c.bf16 %v501_v29, %v500_v28  ;;  %v364_v35 = vsel %vm316_vm13, %v1579_v43, 0.0  ;;  %v365_v36 = vsel %vm317_vm14, %v1582_v44, 0.0  ;;  %v1665_v39 = vadd.s32 %v286_v32, %v1488_v6 }
  0x34   : > { %1097 = vmatpush3.bf16.xpose.msk.msra.mxu0 %vm1554_vm8, %v1095_v45  ;;  %v1668_v40 = vadd.s32 %v287_v33, %v1488_v6  ;;  %v502_v41 = vmul.f32 %v364_v35, %v364_v35  ;;  %v503_v42 = vmul.f32 %v365_v36, %v365_v36  ;;  %v288_v45 = vadd.s32 96, %v1503_v11 }
  0x35   : > { %1098 = vmatprep.subr.bf16.mxu0 %v1364_v5  ;;  %vm318_vm15 = vcmp.lt.s32.totalorder %v1665_v39, 300  ;;  %v1690_v61 = vadd.s32 %v289_v51, %v1488_v6  ;;  %v291_v28 = vadd.s32 120, %v1503_v11  ;;  %v1709_v33 = vadd.s32 %v290_v22, %v1488_v6 }
  0x36   : > { %1129 = vmatpush3.bf16.xpose.msk.msra.mxu1 %vm1554_vm8, %v1127_v50  ;;  %v1107_v50 = vpack.c.bf16 %v365_v36, %v364_v35  ;;  %vm1888_vm0 = vcmp.lt.s32.totalorder %v1668_v40, 300  ;;  %v1139_v52 = vpack.c.bf16 %v503_v42, %v502_v41  ;;  %v366_v55 = vsel %vm318_vm15, %v1589_v47, 0.0 }
  0x37   : > { %1130 = vmatprep.subr.bf16.mxu1 %v1364_v5  ;;  %v367_v56 = vsel %vm1888_vm0, %v1592_v48, 0.0  ;;  %v504_v62 = vmul.f32 %v366_v55, %v366_v55  ;;  %vm1889_vm0 = vcmp.lt.s32.totalorder %v1690_v61, 300  ;;  %v634_v22 = vsub.s32 0, %v1503_v11  ;;  %v734_v11 = vld [vmem:[%s1469_s20] sm:$0xf] }
  0x38   : > { %v1111_v21 = vpack.c.bf16 %v367_v56, %v366_v55  ;;  %v369_v32 = vsel %vm1889_vm0, %v1617_v58, 0.0  ;;  %vm1892_vm0 = vcmp.lt.s32.totalorder %v1709_v33, 300 }
  0x39   : > { %v507_v36 = vmul.f32 %v369_v32, %v369_v32 }
  0x3c   : > { %1101 = vmatpush3.bf16.xpose.msk.msra.mxu0 %vm1554_vm8, %v1099_v60  ;;  %v1685_v60 = vadd.s32 %v288_v45, %v1488_v6  ;;  %v370_v45 = vsel %vm1892_vm0, %v1627_v63, 0.0 }
  0x3d   : > { %1102 = vmatprep.subr.bf16.mxu0 %v1364_v5  ;;  %v508_v51 = vmul.f32 %v370_v45, %v370_v45 }
  0x3e   : > { %1133 = vmatpush3.bf16.xpose.msk.msra.mxu1 %vm1554_vm8, %v1131_v19  ;;  %v505_v19 = vmul.f32 %v367_v56, %v367_v56  ;;  %vm1890_vm1 = vcmp.lt.s32.totalorder %v1685_v60, 300 }
  0x3f   : > { %1134 = vmatprep.subr.bf16.mxu1 %v1364_v5 }
  0x40   : > { %v1143_v29 = vpack.c.bf16 %v505_v19, %v504_v62  ;;  %v266_v62 = vld [vmem:[%s1884_s1] sm:$0xf]  ;;  %v1367_v19 = vmov 1.0  }
  0x44   : > { %1105 = vmatpush3.bf16.xpose.msk.msra.mxu0 %vm1554_vm8, %v1103_v30  ;;  %v368_v30 = vsel %vm1890_vm1, %v1614_v57, 0.0 }
  0x45   : > { %1106 = vmatprep.subr.bf16.mxu0 %v1364_v5  ;;  %v506_v35 = vmul.f32 %v368_v30, %v368_v30  ;;  %v1115_v41 = vpack.c.bf16 %v369_v32, %v368_v30 }
  0x46   : > { %1137 = vmatpush3.bf16.xpose.msk.msra.mxu1 %vm1554_vm8, %v1135_v34  ;;  %v1712_v34 = vadd.s32 %v291_v28, %v1488_v6 }
  0x47   : > { %1138 = vmatprep.subr.bf16.mxu1 %v1364_v5  ;;  %v1147_v42 = vpack.c.bf16 %v507_v36, %v506_v35 }
  0x48   : > { %vm1891_vm1 = vcmp.lt.s32.totalorder %v1712_v34, 300 }
  0x4c   : > { %1109 = vmatpush3.bf16.xpose.msk.msra.mxu0 %vm1554_vm8, %v1107_v50  ;;  %v371_v50 = vsel %vm1891_vm1, %v1630_v0, 0.0 }
  0x4d   : > { %1110 = vmatprep.subr.bf16.mxu0 %v1364_v5  ;;  %v1119_v55 = vpack.c.bf16 %v371_v50, %v370_v45 }
  0x4e   : > { %1141 = vmatpush3.bf16.xpose.msk.msra.mxu1 %vm1554_vm8, %v1139_v52  ;;  %v509_v52 = vmul.f32 %v371_v50, %v371_v50 }
  0x4f   : > { %1142 = vmatprep.subr.bf16.mxu1 %v1364_v5 }
  0x50   : > { %v1151_v56 = vpack.c.bf16 %v509_v52, %v508_v51 }
  0x54   : > { %1113 = vmatpush3.bf16.xpose.msk.msra.mxu0 %vm1554_vm8, %v1111_v21  ;;  %v271_v21 = vand.u32 127, %v270_v4  ;;  %v1368_v4 = vmov 0  }
  0x55   : > { %1114 = vmatprep.subr.bf16.mxu0 %v1364_v5  ;;  %1264 = vset.pattern.permute.xlu1 %v1368_v4 }
  0x56   : > { %1145 = vmatpush3.bf16.xpose.msk.msra.mxu1 %vm1554_vm8, %v1143_v29  ;;  %v1748_v31 = vadd.s32 %v1488_v6, %v271_v21  ;;  %1265 = vset.pattern.permute.xlu0 %v1368_v4 }
  0x57   : > { %1146 = vmatprep.subr.bf16.mxu1 %v1364_v5 }
  0x5c   : > { %1117 = vmatpush3.bf16.xpose.msk.msra.mxu0 %vm1554_vm8, %v1115_v41 }
  0x5d   : > { %1118 = vmatprep.subr.bf16.mxu0 %v1364_v5 }
  0x5e   : > { %1149 = vmatpush3.bf16.xpose.msk.msra.mxu1 %vm1554_vm8, %v1147_v42 }
  0x5f   : > { %1150 = vmatprep.subr.bf16.mxu1 %v1364_v5 }
  0x64   : > { %1121 = vmatpush3.bf16.xpose.msk.msra.mxu0 %vm1554_vm8, %v1119_v55 }
  0x65   : > { %1154 = vmatprep.subr.bf16.mxu0 %v1364_v5 }
  0x66   : > { %1153 = vmatpush3.bf16.xpose.msk.msra.mxu1 %vm1554_vm8, %v1151_v56  ;;  %vm640_vm8 = vcmask 1043456  }
  0x6b   : > { %1018 = vmatmul.mubr.msk.f32.vlgmr.msra.gmra.mrb[0].mxu0 %vm372_vm3, %v266_v62 }
  0x6c   : > { %1087 = vmatprep.mubr.msk.f32.mxu0 %vm1365_vm2, %v1366_v16  ;;  %vm274_vm2 = vcmp.lt.s32.totalorder %v1748_v31, 300 }
  0x6d   : > { %1053 = vmatmul.mubr.msk.f32.vlgmr.msra.gmra.mrb[0].mxu1 %vm372_vm3, %v1367_v19  ;;  %vm737_vm3 = vcmask 3072  }
 0x13e   : > { %v490_v28 = vpop.f32.mrb[0].mxu0 }
 0x13f   : > { %v631_v29 = vmul.f32 2.0, %v490_v28  ;;  %v1019_v30 = vpop.f32.mrb[1].mxu0 }
 0x140   : > { %v627_v32 = vpop.f32.mrb[0].mxu1 }
 0x141   : > { %v635_v35 = vrot.slane %v627_v32, %v634_v22  ;;  %v1054_v36 = vpop.f32.mrb[1].mxu1 }
 0x143   : > { %v636_v16 = vsub.f32 %v635_v35, %v631_v29 }
 0x145   : > { %v639_v41 = vsel %vm274_vm2, %v636_v16, inf  ;;  %vm1156_vm2 = vmpackc.low %vm309_vm5, %vm308_vm4 }
 0x146   : > { %v641_v42 = vsel %vm640_vm8, %v639_v41, inf  ;;  %1157 = vmatpush3.bf16.msk.msra.mxu0 %vm1156_vm2, %v1155_v7  ;;  %vm1164_vm4 = vmpackc.low %vm313_vm10, %vm312_vm9  ;;  %vm1899_vm10 = vcmp.lt.s32.totalorder %v1685_v60, 300 }
 0x147   : > { %642 = vmin.xlane.f32.xlu0 %v641_v42  ;;  %1158 = vmatprep.subr.bf16.mxu0 %v1364_v5  ;;  %vm1168_vm5 = vmpackc.low %vm315_vm12, %vm314_vm11  ;;  %vm1900_vm11 = vcmp.lt.s32.totalorder %v1690_v61, 300 }
 0x148   : > { %vm1180_vm12 = vmpackc.low %vm1900_vm11, %vm1899_vm10 }
 0x1d4   : > { %v643_v45 = vpop.xlane.xlu0 %642 }
 0x1d5   : > { %vm644_vm1 = vcmp.eq.f32.partialorder %v639_v41, %v643_v45  ;;  %vm735_vm0 = vcmp.lt.f32.partialorder %v643_v45, %v734_v11 }
 0x1d6   : > { %v645_v6 = vsel %vm644_vm1, %v1748_v31, 2147483647  ;;  %v736_v50 = vsel %vm735_vm0, %v643_v45, %v734_v11  ;;  %vm1160_vm1 = vmpackc.low %vm311_vm7, %vm310_vm6  ;;  %vm1898_vm7 = vcmp.lt.s32.totalorder %v1668_v40, 300  ;;  %v740_v9 = vsel %vm735_vm0, 1, %v1368_v4 }
 0x1d7   : > { %v646_v51 = vsel %vm640_vm8, %v645_v6, 2147483647  ;;  %738 = vst.msk [vmem:[%s1469_s20] sm:$0xf] %vm737_vm3, %v736_v50  ;;  %1161 = vmatpush3.bf16.msk.msra.mxu0 %vm1160_vm1, %v1159_v12  ;;  %vm1172_vm6 = vmpackc.low %vm317_vm14, %vm316_vm13  ;;  %vm1901_vm14 = vcmp.lt.s32.totalorder %v1709_v33, 300  ;;  %vm746_vm0 = vcmask 257024  }
 0x1d8   : > { %v648_v52 = vshra.s32 %v646_v51, 16  ;;  %1162 = vmatprep.subr.bf16.mxu0 %v1364_v5  ;;  %vm1176_vm9 = vmpackc.low %vm1898_vm7, %vm318_vm15  ;;  %v647_v2 = vand.u32 65535, %v646_v51  ;;  %vm1902_vm15 = vcmp.lt.s32.totalorder %v1712_v34, 300  ;;  %s1270_s20 = sshll.u32 %s1369_s11, 4  ;;  %s1271_s20 = int_to_ptr.vmem [resolvable:$false] %s1270_s20 }
 0x1d9   : > { %vm1184_vm8 = vmpackc.low %vm1902_vm15, %vm1901_vm14  ;;  %s1272_s21 = scalar_lea.vmem %s1271_s20, 128  ;;  %p1273_p6 = scmp.lt.s32.totalorder %s1829_s6, %s1271_s20 }
 0x1da   : > { %v650_v55 = vcvt.s32.f32 %v648_v52  ;;  %v649_v7 = vcvt.s32.f32 %v647_v2  ;;  %p1274_p7 = scmp.lt.s32.totalorder %s1272_s21, %s1266_s10 }
 0x1db   : > { %1165 = vmatpush3.bf16.msk.msra.mxu0 %vm1164_vm4, %v1163_v17  ;;  %v739_v17 = vld [vmem:[%s1476_s30] sm:$0xf] }
 0x1dc   : > { %651 = vmin.xlane.f32.xlu0 %v650_v55  ;;  %1166 = vmatprep.subr.bf16.mxu0 %v1364_v5  ;;  %p1275_p8 = por %p1274_p7, %p1273_p6 }
 0x1de   : > { %p1276_p10 = pnand %p1275_p8, %p1269_p5 }
 0x1df   : > { %1169 = vmatpush3.bf16.msk.msra.mxu0 %vm1168_vm5, %v1167_v18 }
 0x1e0   : > { %1170 = vmatprep.subr.bf16.mxu0 %v1364_v5 }
 0x1e3   : > { %1173 = vmatpush3.bf16.msk.msra.mxu0 %vm1172_vm6, %v1171_v46 }
 0x1e4   : > { %1174 = vmatprep.subr.bf16.mxu0 %v1364_v5 }
 0x1e7   : > { %1177 = vmatpush3.bf16.msk.msra.mxu0 %vm1176_vm9, %v1175_v49 }
 0x1e8   : > { %1178 = vmatprep.subr.bf16.mxu0 %v1364_v5 }
 0x1eb   : > { %1181 = vmatpush3.bf16.msk.msra.mxu0 %vm1180_vm12, %v1179_v59 }
 0x1ec   : > { %1182 = vmatprep.subr.bf16.mxu0 %v1364_v5 }
 0x1ef   : > { %1185 = vmatpush3.bf16.msk.msra.mxu0 %vm1184_vm8, %v1183_v1 }
 0x269   : > { %v652_v3 = vpop.xlane.xlu0 %651 }
 0x26a   : > { %vm653_vm13 = vcmp.eq.f32.partialorder %v650_v55, %v652_v3  ;;  %v658_v5 = vcvt.f32.s32 %v652_v3 }
 0x26b   : > { %v654_v8 = vsel %vm653_vm13, %v649_v7, inf }
 0x26c   : > { %655 = vmin.xlane.f32.xlu1 %v654_v8  ;;  %v659_v12 = vshll.u32 %v658_v5, 16 }
 0x27d   : > { %742 = vperm.xlu1 %1264, %v740_v9  }
 0x2f9   : > { %v656_v10 = vpop.xlane.xlu1 %655 }
 0x2fa   : > { %v657_v13 = vcvt.f32.s32 %v656_v10 }
 0x2fc   : > { %v660_v14 = vadd.s32 %v659_v12, %v657_v13 }
 0x2fd   : > { %v743_v15 = vpop.permute.xlu1 %742 }
 0x2fe   : > { %vm661_vm3 = vcmp.eq.s32.totalorder %v1748_v31, %v660_v14  ;;  %vm744_vm2 = vcmp.eq.s32.totalorder %v743_v15, 1 }
 0x2ff   : > { %1088 = vmatmul.mubr.msk.f32.vlgmr.msra.gmra.mrb[2].mxu0 %vm661_vm3, %v1367_v19 }
 0x3d2   : > { %v730_v18 = vpop.f32.mrb[2].mxu0 }
 0x3d3   : > { %v745_v20 = vsel %vm744_vm2, %v730_v18, %v739_v17  ;;  %v1089_v23 = vpop.f32.mrb[3].mxu0 }
 0x3d4   : > { %747 = vst.msk [vmem:[%s1476_s30] sm:$0xf] %vm746_vm0, %v745_v20 }
 0x3d5   : > { %1279 = shalt.err (!%p1276_p10)
}
 0x3d6   : > { %s1280_s29 = scalar_lea.hbm %s1827_s9, 64  ;;  %s1284_s30 = scalar_lea.hbm %s1886_s3, 128 }
 0x3d7   : > { %p1281_p11 = scmp.ne.s32.totalorder %s1827_s9, %s1280_s29  ;;  %p1285_p0 = scmp.lt.u32.totalorder %s1827_s9, %s1886_s3 }
 0x3d8   : > { %p1286_p1 = scmp.lt.u32.totalorder %s1284_s30, %s1280_s29  ;;  %p1288_p4 = scmp.lt.u32.totalorder %s1280_s29, %s1827_s9 }
 0x3d9   : > { %p1282_p12 = pnand %p1281_p11, %p1439_p3 }
 0x3da   : > { %p1287_p2 = por %p1286_p1, %p1285_p0 }
 0x3db   : > { %p1283_p13 = pneg %p1282_p12 }
 0x3dc   : > { %p1289_p5 = por %p1288_p4, %p1287_p2 }
 0x3de   : > { %p1290_p6 = pnand %p1289_p5, %p1283_p13 }
 0x3e0   : > { %1293 = shalt.err (!%p1290_p6)
}
 0x3e1   : > { %1186 = dma.vmem_to_hbm [thread:$0]  (%p1439_p3), %s1829_s6, 64, %s1827_s9, %s753_s16  }
 0x3e2 PF: > { %p1192_p7 = scmp.ge.s32.totalorder %s1360_s19, 2  ;;  %s788_s4 = sand.u32 1, %s1332_s12  }
 0x3e3   : > { %s789_s5 = scalar_lea.sflag [#allocation3], %s788_s4 }
 0x3e4   : > { %p1189_p8 = pnand %p1192_p7, %p1449_p9 }
 0x3e6   : > { %1327 = dma.done.wait (!%p1189_p8), %s789_s5, 64  }
 0x3e7   : > { %1329 = vsyncadd (!%p1189_p8), %s789_s5, 4294967232  ;;  %s17_s19 = sadd.s32 1, %s1360_s19   ;;  %s1903_s24 = sld [smem:[#allocation5_spill]] }
 0x3e8   : > { %p14_p10 = scmp.ge.s32.totalorder %s17_s19, 6   ;;  %s1904_s12 = smov %s1336_s13 }
 0x3e9   : > { %s1905_s13 = smov %s1340_s14  ;;  %s1906_s14 = smov %s1457_s28 }
 0x3ea   : > { %s1907_s15 = smov %s1352_s17  ;;  %s1908_s16 = smov %s1356_s18 }
 0x3eb   : > { %s1909_s17 = smov %s1912_s22  ;;  %16 = sbr.rel (!%p14_p10) target bundleno = 5 (0x5), region = 79 }
 0x3ed   : > { %s1910_s18 = smov %s1903_s24 }
 0x3f2   :  { %794 = vsyncpa [#allocation3], 1 }
 0x3f3   :  { %796 = vsyncpa [#allocation3 + $0x1], 1 }

</bundles_post_ra>
